<compile_context>
chip_gen: v6e
topology: v6e:2x2x1
jax: 0.10.0
libtpu: 0.0.40
codegen_flags: <defaults>
</compile_context>

<pallas_src>
import jax
import jax.numpy as jnp
from jax.experimental import pallas as pl
from jax.experimental.pallas import tpu as pltpu


def attention_kernel(x_ref, w1_ref, t1_ref, w2_ref, t2_ref, o_ref):
    # x_ref: (C, Lt)   w1_ref: (O, C)  t1: (O, 1)   w2_ref: (C, O)  t2: (C, 1)
    # o_ref: (C, Lt)
    x = x_ref[...].astype(jnp.float32)                                  # (C, Lt)

    # conv1x1_1 (BN scale pre-folded into w1): matmul + shift + ReLU
    h = jnp.dot(w1_ref[...], x, preferred_element_type=jnp.float32)    # (O, Lt)
    h = jnp.maximum(h + t1_ref[...], 0.0)

    # conv1x1_2 (BN scale pre-folded into w2): matmul + shift + Sigmoid
    g = jnp.dot(w2_ref[...], h, preferred_element_type=jnp.float32)    # (C, Lt)
    g = jax.nn.sigmoid(g + t2_ref[...])

    # gate the original input
    o_ref[...] = (g * x).astype(o_ref.dtype)


def _pick_lane_tile(num_lanes, rows):
    """Lane tile for the merged (C, N*L) slab.

    Must be a multiple of 128 (or the full extent). Prefer >= 2 grid steps so both
    v7x TensorCores get work, while capping the per-block footprint (~2 MiB of x)
    so double-buffered blocks stay far below v7x's 32 MiB scoped-VMEM default.
    """
    if num_lanes % 128 != 0:
        return num_lanes                       # single full-extent block
    cap = max(128, ((2 << 20) // (4 * rows)) // 128 * 128)
    tile = min(num_lanes, cap)
    while num_lanes % tile != 0:               # must divide evenly
        tile -= 128
    if num_lanes // tile < 2 and (num_lanes // 2) % 128 == 0:
        tile = num_lanes // 2                  # guarantee >= 2 parallel steps
    return tile


def attention_forward(x, w1, b1, bn1, w2, b2, bn2, eps=1e-5):
    """x: (N, C, L) float32. w1: (O, C), w2: (C, O). bn = (gamma, beta, mean, var)."""
    N, C, L = x.shape
    O = w1.shape[0]

    # Fold conv bias + eval-mode BatchNorm into the weights (row scale) and a shift.
    def fold(w, bias, bn):
        gamma, beta, mean, var = bn
        s = gamma / jnp.sqrt(var + eps)                        # (out,)
        wf = (w * s[:, None]).astype(jnp.float32)              # scale rows of W
        tf = ((bias - mean) * s + beta).reshape(-1, 1).astype(jnp.float32)
        return wf, tf

    w1f, t1 = fold(w1, b1, bn1)   # (O, C), (O, 1)
    w2f, t2 = fold(w2, b2, bn2)   # (C, O), (C, 1)

    # Lane-dense layout: merge batch into the lane axis -> (C, N*L).
    NL = N * L
    x2d = jnp.transpose(x, (1, 0, 2)).reshape(C, NL)

    lane_tile = _pick_lane_tile(NL, C)
    grid = (NL // lane_tile,)

    grid_spec = pltpu.PrefetchScalarGridSpec(
        num_scalar_prefetch=0,
        grid=grid,
        in_specs=[
            pl.BlockSpec((C, lane_tile), lambda i: (0, i)),   # x slab tile
            pl.BlockSpec((O, C), lambda i: (0, 0)),           # w1 (BN-folded)
            pl.BlockSpec((O, 1), lambda i: (0, 0)),           # t1
            pl.BlockSpec((C, O), lambda i: (0, 0)),           # w2 (BN-folded)
            pl.BlockSpec((C, 1), lambda i: (0, 0)),           # t2
        ],
        out_specs=pl.BlockSpec((C, lane_tile), lambda i: (0, i)),
    )

    cost = pl.CostEstimate(
        flops=int(2 * O * C * NL + 2 * C * O * NL + 4 * C * NL),
        transcendentals=int(C * NL),
        bytes_accessed=int(4 * (2 * C * NL + O * C + C * O + O + C)),
    )

    out2d = pl.pallas_call(
        attention_kernel,
        out_shape=jax.ShapeDtypeStruct((C, NL), x.dtype),
        grid_spec=grid_spec,
        compiler_params=pltpu.CompilerParams(dimension_semantics=("parallel",)),
        cost_estimate=cost,
        input_output_aliases={0: 0},   # gated output reuses the x slab's buffer
    )(x2d, w1f, t1, w2f, t2)

    # Back to (N, C, L).
    return out2d.reshape(C, N, L).transpose(1, 0, 2)


def attention_reference(x, w1, b1, bn1, w2, b2, bn2, eps=1e-5):
    """Plain-JAX reference of the same forward (eval-mode BN)."""
    def bn_apply(y, bn):
        gamma, beta, mean, var = bn
        inv = gamma / jnp.sqrt(var + eps)
        return (y - mean[None, :, None]) * inv[None, :, None] + beta[None, :, None]

    h = jnp.einsum("oc,ncl->nol", w1, x) + b1[None, :, None]
    h = jax.nn.relu(bn_apply(h, bn1))
    g = jnp.einsum("co,nol->ncl", w2, h) + b2[None, :, None]
    g = jax.nn.sigmoid(bn_apply(g, bn2))
    return g * x


if __name__ == "__main__":
    # Small shapes consistent with the module (input_nc == output_nc).
    N, C, L = 2, 32, 128        # batch, channels, sequence length
    O = C

    key = jax.random.PRNGKey(0)
    kx, kw1, kb1, kw2, kb2 = jax.random.split(key, 5)

    x = jax.random.normal(kx, (N, C, L), dtype=jnp.float32)

    # Conv1d(k=1) weights, squeezed to (out, in). Deterministic init.
    w1 = jax.random.normal(kw1, (O, C), dtype=jnp.float32) * 0.1
    b1 = jax.random.normal(kb1, (O,), dtype=jnp.float32) * 0.1
    w2 = jax.random.normal(kw2, (C, O), dtype=jnp.float32) * 0.1
    b2 = jax.random.normal(kb2, (C,), dtype=jnp.float32) * 0.1

    # BatchNorm1d params at PyTorch init: gamma=1, beta=0, running_mean=0, running_var=1.
    bn1 = (jnp.ones((O,)), jnp.zeros((O,)), jnp.zeros((O,)), jnp.ones((O,)))
    bn2 = (jnp.ones((C,)), jnp.zeros((C,)), jnp.zeros((C,)), jnp.ones((C,)))

    fwd = jax.jit(attention_forward)
    out = fwd(x, w1, b1, bn1, w2, b2, bn2)
    out = jax.block_until_ready(out)

    ref = attention_reference(x, w1, b1, bn1, w2, b2, bn2)
    assert out.shape == (N, C, L)
    assert jnp.allclose(out, ref, atol=1e-5, rtol=1e-5), "mismatch vs reference"

    print("KERNEL_OK")
</pallas_src>

<mosaic_0001>
module attributes {stable_mosaic.version = 11 : i64} {
  func.func @attention_kernel(%arg0: i32, %arg1: memref<32x128xf32, #tpu.memory_space<vmem>>, %arg2: memref<32x32xf32, #tpu.memory_space<vmem>>, %arg3: memref<32x1xf32, #tpu.memory_space<vmem>>, %arg4: memref<32x32xf32, #tpu.memory_space<vmem>>, %arg5: memref<32x1xf32, #tpu.memory_space<vmem>>, %arg6: memref<32x128xf32, #tpu.memory_space<vmem>>) attributes {dimension_semantics = [#tpu.dimension_semantics<parallel>], iteration_bounds = array<i64: 2>, scalar_prefetch = 0 : i64, scratch_operands = 0 : i64, tpu.core_type = #tpu.core_type<tc>, window_params = [{transform_indices = @transform_0, window_bounds = array<i64: 32, 128>}, {pipeline_mode = #tpu.pipeline_mode<synchronous>, transform_indices = @transform_1, window_bounds = array<i64: 32, 32>}, {pipeline_mode = #tpu.pipeline_mode<synchronous>, transform_indices = @transform_2, window_bounds = array<i64: 32, 1>}, {pipeline_mode = #tpu.pipeline_mode<synchronous>, transform_indices = @transform_3, window_bounds = array<i64: 32, 32>}, {pipeline_mode = #tpu.pipeline_mode<synchronous>, transform_indices = @transform_4, window_bounds = array<i64: 32, 1>}, {transform_indices = @transform_5, window_bounds = array<i64: 32, 128>}]} {
    %c0 = arith.constant 0 : index
    %c0_0 = arith.constant 0 : index
    %0 = vector.load %arg1[%c0, %c0_0] : memref<32x128xf32, #tpu.memory_space<vmem>>, vector<32x128xf32>
    %c0_1 = arith.constant 0 : index
    %c0_2 = arith.constant 0 : index
    %1 = vector.load %arg2[%c0_1, %c0_2] : memref<32x32xf32, #tpu.memory_space<vmem>>, vector<32x32xf32>
    %cst = arith.constant dense<0.000000e+00> : vector<32x128xf32>
    %2 = tpu.matmul %1, %0, %cst {dimension_numbers = #tpu.dot_dimension_numbers<[1], [0], [0], [1], [0, 0, 1, 1], [], []>} : vector<32x32xf32>, vector<32x128xf32>, vector<32x128xf32> -> vector<32x128xf32>
    %c0_3 = arith.constant 0 : index
    %c0_4 = arith.constant 0 : index
    %3 = vector.load %arg3[%c0_3, %c0_4] : memref<32x1xf32, #tpu.memory_space<vmem>>, vector<32x1xf32>
    %4 = vector.broadcast %3 : vector<32x1xf32> to vector<32x128xf32>
    %5 = arith.addf %2, %4 : vector<32x128xf32>
    %cst_5 = arith.constant 0.000000e+00 : f32
    %6 = vector.broadcast %cst_5 : f32 to vector<32x128xf32>
    %7 = arith.maximumf %5, %6 : vector<32x128xf32>
    %c0_6 = arith.constant 0 : index
    %c0_7 = arith.constant 0 : index
    %8 = vector.load %arg4[%c0_6, %c0_7] : memref<32x32xf32, #tpu.memory_space<vmem>>, vector<32x32xf32>
    %cst_8 = arith.constant dense<0.000000e+00> : vector<32x128xf32>
    %9 = tpu.matmul %8, %7, %cst_8 {dimension_numbers = #tpu.dot_dimension_numbers<[1], [0], [0], [1], [0, 0, 1, 1], [], []>} : vector<32x32xf32>, vector<32x128xf32>, vector<32x128xf32> -> vector<32x128xf32>
    %c0_9 = arith.constant 0 : index
    %c0_10 = arith.constant 0 : index
    %10 = vector.load %arg5[%c0_9, %c0_10] : memref<32x1xf32, #tpu.memory_space<vmem>>, vector<32x1xf32>
    %11 = vector.broadcast %10 : vector<32x1xf32> to vector<32x128xf32>
    %12 = arith.addf %9, %11 : vector<32x128xf32>
    %13 = arith.negf %12 : vector<32x128xf32>
    %14 = math.exp %13 : vector<32x128xf32>
    %cst_11 = arith.constant 1.000000e+00 : f32
    %15 = vector.broadcast %cst_11 : f32 to vector<32x128xf32>
    %16 = arith.addf %15, %14 : vector<32x128xf32>
    %17 = arith.divf %15, %16 : vector<32x128xf32>
    %18 = arith.mulf %17, %0 : vector<32x128xf32>
    %c0_12 = arith.constant 0 : index
    %c0_13 = arith.constant 0 : index
    %19 = vector.load %arg6[%c0_12, %c0_13] : memref<32x128xf32, #tpu.memory_space<vmem>>, vector<32x128xf32>
    tpu.vector_store %arg6[%c0_12, %c0_13], %18 {strides = array<i32>} : memref<32x128xf32, #tpu.memory_space<vmem>>, vector<32x128xf32>,
    return
  }
  func.func @transform_0(%arg0: i32) -> (i32, i32) {
    %c0_i32 = arith.constant 0 : i32
    %c0_i32_0 = arith.constant 0 : i32
    return %c0_i32, %arg0 : i32, i32
  }
  func.func @transform_1(%arg0: i32) -> (i32, i32) {
    %c0_i32 = arith.constant 0 : i32
    %c0_i32_0 = arith.constant 0 : i32
    %c0_i32_1 = arith.constant 0 : i32
    return %c0_i32, %c0_i32_0 : i32, i32
  }
  func.func @transform_2(%arg0: i32) -> (i32, i32) {
    %c0_i32 = arith.constant 0 : i32
    %c0_i32_0 = arith.constant 0 : i32
    %c0_i32_1 = arith.constant 0 : i32
    return %c0_i32, %c0_i32_0 : i32, i32
  }
  func.func @transform_3(%arg0: i32) -> (i32, i32) {
    %c0_i32 = arith.constant 0 : i32
    %c0_i32_0 = arith.constant 0 : i32
    %c0_i32_1 = arith.constant 0 : i32
    return %c0_i32, %c0_i32_0 : i32, i32
  }
  func.func @transform_4(%arg0: i32) -> (i32, i32) {
    %c0_i32 = arith.constant 0 : i32
    %c0_i32_0 = arith.constant 0 : i32
    %c0_i32_1 = arith.constant 0 : i32
    return %c0_i32, %c0_i32_0 : i32, i32
  }
  func.func @transform_5(%arg0: i32) -> (i32, i32) {
    %c0_i32 = arith.constant 0 : i32
    %c0_i32_0 = arith.constant 0 : i32
    return %c0_i32, %arg0 : i32, i32
  }
}

</mosaic_0001>

<bundles_post_ra>
// kernel: attention_forward.1
= control target key start
LH: loop header
LB: loop body
LE: loop exit
PB: predicated region body
PF: predicated region fallthrough
CT: control target
= control target key end

     0   :  { %s834_s18 = smov 0   ;;  %s836_s19 = smov 0   ;;  %s974_s0 = inlined_call_operand.vmem [shape: f32[32,256], index: 0, kind: input, shape index: {}, may-alias: {0,5}]   ;;  %s975_s1 = inlined_call_operand.vmem [shape: f32[32,32], index: 1, kind: input, shape index: {}]   ;;  %s976_s2 = inlined_call_operand.vmem [shape: f32[32,1], index: 2, kind: input, shape index: {}]   ;;  %s977_s3 = inlined_call_operand.vmem [shape: f32[32,32], index: 3, kind: input, shape index: {}]   ;;  %s978_s4 = inlined_call_operand.vmem [shape: f32[32,1], index: 4, kind: input, shape index: {}]   ;;  %s979_s5 = inlined_call_operand.vmem [shape: f32[32,256], index: 5, kind: output, shape index: {}, may-alias: {0,5}]  }
   0x1   :  { %s838_s20 = smov 0  }
   0x2 LB: > { %s667_s21 = sadd.s32 4294967295, %s801_s20   ;;  %s851_s22 = sadd.s32 1, %s801_s20   ;;  %s801_s20 = sphi %s838_s20, %s983_s20   ;;  %s797_s19 = sphi %s836_s19, %s982_s19   ;;  %s793_s18 = sphi %s834_s18, %s981_s18  }
   0x3   : > { %s19_s23 = ssub.s32 %s801_s20, %s851_s22  ;;  %s22_s24 = sadd.s32 1, %s797_s19 }
   0x4   : > { %p20_p0 = scmp.eq.s32.totalorder %s19_s23, 0  ;;  %p29_p1 = scmp.ne.s32.totalorder %s797_s19, %s793_s18 }
   0x5   : > { %p30_p2 = scmp.eq.s32.totalorder %s801_s20, 0  ;;  %p143_p3 = scmp.eq.s32.totalorder %s667_s21, 1 }
   0x6   : > { %s862_s25 = scalar_select %p20_p0, %s797_s19, %s22_s24  }
   0x7   : > { %p31_p4 = por %p30_p2, %p29_p1  ;;  %p864_p5 = por %p143_p3, %p29_p1 }
   0x8   : > { %p670_p6 = scmp.ge.s32.totalorder %s801_s20, 2 }
   0xa   : > { %177 = sbr.rel (%p670_p6) target bundleno = 21 (0x15), region = 32 }
   0xf   : > { %180 = sbr.rel (!%p31_p4) target bundleno = 21 (0x15), region = 36  ;;  %s182_s27 = sand.u32 (%p31_p4), 1, %s797_s19  }
  0x10   : > { %s672_s28 = sshll.u32 (%p31_p4), %s801_s20, 3  ;;  %s671_s29 = sshll.u32 (%p31_p4), %s182_s27, 5 }
  0x11   : > { %s186_s7 = scalar_lea.vmem (%p31_p4), %s974_s0, %s672_s28  ;;  %s184_s8 = scalar_lea.vmem (%p31_p4), [#allocation2], %s671_s29 }
  0x12   : > { %v221_v0 = vld [vmem:[%s186_s7] sm:$0xff] (%p31_p4)  ;;  %v223_v1 = vld [vmem:[%s186_s7 + $0x10] sm:$0xff] (%p31_p4) }
  0x13   : > { %v225_v2 = vld [vmem:[%s186_s7 + $0x20] sm:$0xff] (%p31_p4)  ;;  %222 = vst [vmem:[%s184_s8] sm:$0xff] (%p31_p4), %v221_v0  ;;  %224 = vst [vmem:[%s184_s8 + $0x8] sm:$0xff] (%p31_p4), %v223_v1  ;;  %v227_v3 = vld [vmem:[%s186_s7 + $0x30] sm:$0xff] (%p31_p4) }
  0x14   : > { %226 = vst [vmem:[%s184_s8 + $0x10] sm:$0xff] %v225_v2  ;;  %228 = vst [vmem:[%s184_s8 + $0x18] sm:$0xff] %v227_v3 }
  0x15 PF: > { %p673_p7 = scmp.ge.s32.totalorder %s801_s20, 1  ;;  %p233_p8 = scmp.lt.s32.totalorder %s801_s20, 3 }
  0x17   : > { %p234_p9 = pnand %p673_p7, %p233_p8 }
  0x18   : > { %s240_s9 = sand.u32 (!%p234_p9), 1, %s793_s18  }
  0x19   : > { %237 = sbr.rel (%p234_p9) target bundleno = 494 (0x1ee), region = 74  ;;  %s880_s12 = sshll.u32 (!%p234_p9), %s240_s9, 5 }
  0x1a   : > { %s242_s17 = scalar_lea.vmem (!%p234_p9), [#allocation2], %s880_s12  ;;  %s265_s7 = scalar_lea.vmem (!%p234_p9), [#allocation3], %s880_s12 }
  0x1e   : > { %v270_v4 = vld [vmem:[%s975_s1] sm:$0xff]  ;;  %vm298_vm0 = vcmask 261120   ;;  %v803_v5 = vmov 0   ;;  %v277_v6 = vld [vmem:[%s976_s2 + $0x18] sm:$0xff]  ;;  %v275_v7 = vld [vmem:[%s976_s2 + $0x8] sm:$0xff]  ;;  %s689_s8 = sshll.u32 (%p864_p5), %s667_s21, 3 }
  0x1f   : > { %716 = vmatprep.mubr.msk.f32.mxu0 %vm298_vm0, %v270_v4  ;;  %761 = vset.pattern.permute.xlu0 %v803_v5  ;;  %v890_v8 = vld [vmem:[%s242_s17 + $0x18] sm:$0xff]  ;;  %v892_v9 = vld [vmem:[%s242_s17 + $0x10] sm:$0xff]  ;;  %v274_v11 = vld [vmem:[%s976_s2] sm:$0xff]  ;;  %s565_s10 = scalar_lea.vmem (%p864_p5), %s979_s5, %s689_s8 }
  0x20   : > { %295 = vperm.xlu0 %761, %v277_v6   ;;  %762 = vset.pattern.permute.xlu1 %v803_v5  ;;  %v276_v10 = vld [vmem:[%s976_s2 + $0x10] sm:$0xff]  ;;  %v902_v12 = vld [vmem:[%s242_s17 + $0x8] sm:$0xff]  ;;  %v906_v13 = vld [vmem:[%s242_s17] sm:$0xff] }
  0x21   : > { %285 = vperm.xlu1 %762, %v275_v7   ;;  %708 = vmatprep.subr.mxu0 %v890_v8  ;;  %v404_v14 = vld [vmem:[%s978_s4] sm:$0xff]  ;;  %v405_v15 = vld [vmem:[%s978_s4 + $0x8] sm:$0xff]  ;;  %v272_v17 = vld [vmem:[%s975_s1 + $0x10] sm:$0xff] }
  0x22   : > { %709 = vmatpush3.msra.mxu0 %v890_v8  ;;  %v271_v16 = vld [vmem:[%s975_s1 + $0x8] sm:$0xff]  ;;  %v406_v18 = vld [vmem:[%s978_s4 + $0x10] sm:$0xff]  ;;  %v407_v19 = vld [vmem:[%s978_s4 + $0x18] sm:$0xff] }
  0x23   : > { %710 = vmatprep.subr.mxu0 %v892_v9  ;;  %v273_v20 = vld [vmem:[%s975_s1 + $0x18] sm:$0xff]  ;;  %v400_v21 = vld [vmem:[%s977_s3] sm:$0xff]  ;;  %v401_v38 = vld [vmem:[%s977_s3 + $0x8] sm:$0xff] }
  0x24   : > { %290 = vperm.xlu0 %761, %v276_v10   ;;  %711 = vmatpush3.msra.mxu0 %v892_v9  ;;  %v402_v39 = vld [vmem:[%s977_s3 + $0x10] sm:$0xff]  ;;  %v403_v40 = vld [vmem:[%s977_s3 + $0x18] sm:$0xff] }
  0x25   : > { %280 = vperm.xlu1 %762, %v274_v11   ;;  %712 = vmatprep.subr.mxu0 %v902_v12 }
  0x26   : > { %713 = vmatpush3.msra.mxu0 %v902_v12  ;;  %730 = vmatprep.mubr.msk.f32.mxu1 %vm298_vm0, %v400_v21 }
  0x27   : > { %714 = vmatprep.subr.mxu0 %v906_v13 }
  0x28   : > { %410 = vperm.xlu0 %761, %v404_v14   ;;  %715 = vmatpush3.msra.mxu0 %v906_v13 }
  0x29   : > { %415 = vperm.xlu1 %762, %v405_v15   ;;  %717 = vmatmul.mubr.msk.f32.vlgmr.msra.gmra.mxu0 %vm298_vm0, %v271_v16 }
  0x2a   : > { %719 = vmatprep.mubr.msk.f32.mxu0 %vm298_vm0, %v272_v17 }
  0x2c   : > { %420 = vperm.xlu0 %761, %v406_v18  }
  0x2d   : > { %425 = vperm.xlu1 %762, %v407_v19   ;;  %720 = vmatmul.mubr.msk.f32.gmra.mxu0 %vm298_vm0, %v273_v20 }
  0x9b   : > { %v296_v22 = vpop.permute.xlu0 %295 }
  0x9c   : > { %v286_v24 = vpop.permute.xlu1 %285 }
  0x9f   : > { %v291_v28 = vpop.permute.xlu0 %290 }
  0xa0   : > { %v281_v33 = vpop.permute.xlu1 %280 }
  0xa3   : > { %v411_v42 = vpop.permute.xlu0 %410 }
  0xa4   : > { %v416_v41 = vpop.permute.xlu1 %415 }
  0xa7   : > { %v421_v52 = vpop.permute.xlu0 %420 }
  0xa8   : > { %v426_v48 = vpop.permute.xlu1 %425 }
  0xe9   : > { %v718_v23 = vpop.f32.mrf.mxu0 }
  0xea   : > { %v383_v30 = vadd.f32 %v718_v23, %v286_v24 }
  0xeb   : > { %v377_v25 = vpop.f32.mrf.mxu0 }
  0xec   : > { %v378_v34 = vadd.f32 %v377_v25, %v281_v33  ;;  %v397_v36 = vmax.f32 %v383_v30, 0.0 }
  0xed   : > { %v721_v26 = vpop.f32.mrf.mxu0 }
  0xee   : > { %v393_v27 = vadd.f32 %v721_v26, %v296_v22  ;;  %v396_v37 = vmax.f32 %v378_v34, 0.0 }
  0xef   : > { %v387_v29 = vpop.f32.mrf.mxu0 }
  0xf0   : > { %v399_v31 = vmax.f32 %v393_v27, 0.0  ;;  %v388_v32 = vadd.f32 %v387_v29, %v291_v28 }
  0xf2   : > { %v398_v35 = vmax.f32 %v388_v32, 0.0  ;;  %722 = vmatprep.subr.mxu1 %v399_v31 }
  0xf3   : > { %723 = vmatpush3.msra.mxu1 %v399_v31 }
  0xf4   : > { %724 = vmatprep.subr.mxu1 %v398_v35 }
  0xf5   : > { %725 = vmatpush3.msra.mxu1 %v398_v35 }
  0xf6   : > { %726 = vmatprep.subr.mxu1 %v397_v36 }
  0xf7   : > { %727 = vmatpush3.msra.mxu1 %v397_v36 }
  0xf8   : > { %728 = vmatprep.subr.mxu1 %v396_v37 }
  0xf9   : > { %729 = vmatpush3.msra.mxu1 %v396_v37 }
  0xfa   : > { %731 = vmatmul.mubr.msk.f32.vlgmr.msra.gmra.mxu1 %vm298_vm0, %v401_v38 }
  0xfb   : > { %733 = vmatprep.mubr.msk.f32.mxu1 %vm298_vm0, %v402_v39 }
  0xfe   : > { %734 = vmatmul.mubr.msk.f32.gmra.mxu1 %vm298_vm0, %v403_v40 }
 0x1ba   : > { %v732_v43 = vpop.f32.mrf.mxu1 }
 0x1bb   : > { %v512_v44 = vadd.f32 %v732_v43, %v416_v41 }
 0x1bc   : > { %v506_v45 = vpop.f32.mrf.mxu1 }
 0x1bd   : > { %v685_v46 = vmul.f32 -1.442695, %v512_v44  ;;  %v507_v47 = vadd.f32 %v506_v45, %v411_v42 }
 0x1be   : > { %v735_v49 = vpop.f32.mrf.mxu1 }
 0x1bf   : > { %763 = vpow2.f32 %v685_v46  ;;  %v684_v50 = vmul.f32 -1.442695, %v507_v47  ;;  %v522_v51 = vadd.f32 %v735_v49, %v426_v48 }
 0x1c0   : > { %v516_v53 = vpop.f32.mrf.mxu1 }
 0x1c1   : > { %765 = vpow2.f32 %v684_v50  ;;  %v687_v54 = vmul.f32 -1.442695, %v522_v51  ;;  %v517_v55 = vadd.f32 %v516_v53, %v421_v52 }
 0x1c3   : > { %767 = vpow2.f32 %v687_v54  ;;  %v686_v56 = vmul.f32 -1.442695, %v517_v55 }
 0x1c5   : > { %769 = vpow2.f32 %v686_v56 }
 0x1cc   : > { %v764_v57 = vpop.eup %763 }
 0x1cd   : > { %v538_v58 = vadd.f32 1.0, %v764_v57 }
 0x1ce   : > { %v766_v59 = vpop.eup %765 }
 0x1cf   : > { %771 = vrcp.f32 %v538_v58  ;;  %v537_v60 = vadd.f32 1.0, %v766_v59 }
 0x1d0   : > { %v768_v61 = vpop.eup %767 }
 0x1d1   : > { %773 = vrcp.f32 %v537_v60  ;;  %v540_v62 = vadd.f32 1.0, %v768_v61 }
 0x1d2   : > { %v770_v63 = vpop.eup %769 }
 0x1d3   : > { %775 = vrcp.f32 %v540_v62  ;;  %v539_v0 = vadd.f32 1.0, %v770_v63 }
 0x1d5   : > { %777 = vrcp.f32 %v539_v0 }
 0x1dc   : > { %v772_v1 = vpop.eup %771 }
 0x1dd   : > { %v550_v2 = vmul.f32 %v772_v1, %v902_v12 }
 0x1de   : > { %v774_v3 = vpop.eup %773 }
 0x1df   : > { %554 = vst [vmem:[%s265_s7 + $0x8] sm:$0xff] %v550_v2  ;;  %v549_v4 = vmul.f32 %v774_v3, %v906_v13 }
 0x1e0   : > { %v776_v5 = vpop.eup %775 }
 0x1e1   : > { %553 = vst [vmem:[%s265_s7] sm:$0xff] %v549_v4  ;;  %v552_v6 = vmul.f32 %v776_v5, %v890_v8  ;;  %563 = sbr.rel (!%p864_p5) target bundleno = 494 (0x1ee), region = 82 }
 0x1e2   : > { %v778_v7 = vpop.eup %777 }
 0x1e3   : > { %556 = vst [vmem:[%s265_s7 + $0x18] sm:$0xff] %v552_v6  ;;  %v551_v10 = vmul.f32 %v778_v7, %v892_v9 }
 0x1e5   : > { %555 = vst [vmem:[%s265_s7 + $0x10] sm:$0xff] %v551_v10 }
 0x1e6   : > { %v602_v12 = vld [vmem:[%s265_s7 + $0x8] sm:$0xff] }
 0x1e7   : > { %603 = vst [vmem:[%s565_s10 + $0x10] sm:$0xff] %v602_v12 }
 0x1e8   : > { %v600_v11 = vld [vmem:[%s265_s7] sm:$0xff] }
 0x1e9   : > { %601 = vst [vmem:[%s565_s10] sm:$0xff] %v600_v11 }
 0x1ea   : > { %v606_v13 = vld [vmem:[%s265_s7 + $0x18] sm:$0xff] }
 0x1eb   : > { %607 = vst [vmem:[%s565_s10 + $0x30] sm:$0xff] %v606_v13 }
 0x1ec   : > { %v604_v14 = vld [vmem:[%s265_s7 + $0x10] sm:$0xff] }
 0x1ed   : > { %605 = vst [vmem:[%s565_s10 + $0x20] sm:$0xff] %v604_v14 }
 0x1ee PF: > { %p12_p10 = scmp.ge.s32.totalorder %s851_s22, 4   ;;  %s981_s18 = smov %s797_s19 }
 0x1ef   : > { %s982_s19 = smov %s862_s25  ;;  %s983_s20 = smov %s851_s22 }
 0x1f0   :  { %14 = sbr.rel (!%p12_p10) target bundleno = 2 (0x2), region = 151 }

</bundles_post_ra>
